<compile_context>
chip_gen: v7x
topology: tpu7x:2x2x1
jax: 0.10.0
libtpu: 0.0.40
codegen_flags: <defaults>
</compile_context>

<pallas_src>
import functools

import numpy as np
import jax
import jax.numpy as jnp
from jax.experimental import pallas as pl
from jax.experimental.pallas import tpu as pltpu


# ----------------------------------------------------------------------------------
# Pallas kernels
# ----------------------------------------------------------------------------------
def _matmul_bias_relu_kernel(x_ref, w_ref, b_ref, o_ref):
    # x: [TM, K] bf16, w: [K, Np] bf16, b: [1, Np] f32 -> o: [TM, Np] f32
    acc = jnp.dot(x_ref[...], w_ref[...], preferred_element_type=jnp.float32)
    o_ref[...] = jnp.maximum(acc + b_ref[...], 0.0)


def _matmul_kernel(f_ref, g_ref, o_ref):
    # f: [Cp, hw] f32, g: [hw, TN] f32 -> o: [Cp, TN] f32
    o_ref[...] = jnp.dot(f_ref[...], g_ref[...], preferred_element_type=jnp.float32)


# ----------------------------------------------------------------------------------
# Pallas wrappers
# ----------------------------------------------------------------------------------
def _round_up(x, m):
    return ((x + m - 1) // m) * m


def matmul_bias_relu(x, w, b):
    """relu(x @ w + b). x: [M, K], w: [K, N], b: [N] -> [M, N] (float32).

    bf16 operands / f32 accumulation. K is left un-padded (full-extent block);
    only M (sublane) and N (lane, to 128) are padded so output stores are lane-dense.
    Padded rows/cols are sliced off before returning.
    """
    M, K = x.shape
    _, N = w.shape
    TM = min(512, _round_up(M, 256))          # big tiles; single step for toy sizes
    Mp = _round_up(M, TM)
    Np = _round_up(N, 128)

    xb = x.astype(jnp.bfloat16)
    if Mp != M:
        xb = jnp.pad(xb, ((0, Mp - M), (0, 0)))
    wb = w.astype(jnp.bfloat16)
    if Np != N:
        wb = jnp.pad(wb, ((0, 0), (0, Np - N)))
    bb = b.astype(jnp.float32)
    if Np != N:
        bb = jnp.pad(bb, (0, Np - N))
    bb = bb.reshape(1, Np)

    # TODO(synk): for production K (C_in*9 up to ~4.6K) add a K grid axis with an f32
    #             VMEM accumulator (pl.when init/finalize) and set vmem_limit_bytes so
    #             per-step VMEM stays bounded on v7x (64 MiB).  Not needed at K<=144.
    out = pl.pallas_call(
        _matmul_bias_relu_kernel,
        out_shape=jax.ShapeDtypeStruct((Mp, Np), jnp.float32),
        grid=(Mp // TM,),
        in_specs=[
            pl.BlockSpec((TM, K), lambda i: (i, 0)),
            # NOTE: constant index_map for w/b; single-buffering (pl.Buffered(1)) would
            #       halve their VMEM footprint but is negligible at these weight sizes.
            pl.BlockSpec((K, Np), lambda i: (0, 0)),
            pl.BlockSpec((1, Np), lambda i: (0, 0)),
        ],
        out_specs=pl.BlockSpec((TM, Np), lambda i: (i, 0)),
        compiler_params=pltpu.CompilerParams(dimension_semantics=("parallel",)),
    )(xb, wb, bb)
    return out[:M, :N]


def gather_matmul(f_flat, g_t, tn):
    """f_flat: [C, hw] f32, g_t: [hw, Npad] f32 -> [Cp, Npad] f32 via Pallas matmul."""
    C, hw = f_flat.shape
    _, n_pad = g_t.shape
    Cp = _round_up(C, 8)
    fp = f_flat.astype(jnp.float32)
    if Cp != C:
        fp = jnp.pad(fp, ((0, Cp - C), (0, 0)))
    return pl.pallas_call(
        _matmul_kernel,
        out_shape=jax.ShapeDtypeStruct((Cp, n_pad), jnp.float32),
        grid=(n_pad // tn,),
        in_specs=[
            pl.BlockSpec((Cp, hw), lambda j: (0, 0)),
            pl.BlockSpec((hw, tn), lambda j: (0, j)),
        ],
        out_specs=pl.BlockSpec((Cp, tn), lambda j: (0, j)),
        compiler_params=pltpu.CompilerParams(dimension_semantics=("parallel",)),
    )(fp, g_t)


# ----------------------------------------------------------------------------------
# Bilinear interpolation weights (PyTorch F.interpolate, align_corners=False)
# ----------------------------------------------------------------------------------
@functools.lru_cache(maxsize=None)
def _bilinear_matrix(out_size, in_size):
    """1-D interpolation matrix [out_size, in_size]; cached by sizes."""
    i = np.arange(out_size, dtype=np.float64)
    scale = in_size / out_size
    src = (i + 0.5) * scale - 0.5
    src = np.clip(src, 0.0, in_size - 1)
    i0 = np.floor(src).astype(np.int64)
    i1 = np.minimum(i0 + 1, in_size - 1)
    lam = (src - i0).astype(np.float32)
    A = np.zeros((out_size, in_size), np.float32)
    A[np.arange(out_size), i0] += 1.0 - lam
    A[np.arange(out_size), i1] += lam
    return A


# ----------------------------------------------------------------------------------
# Encoder (synthetic VGG-like stand-in): two stride-2 3x3 convs + ReLU
# ----------------------------------------------------------------------------------
def _im2col_nhwc(x_nhwc, k, stride, pad):
    """x: [N, H, W, C] -> [N*Ho*Wo, k*k*C] in (ki, kj, c) column order (reshape-free)."""
    N, H, W, C = x_nhwc.shape
    Ho = (H + 2 * pad - k) // stride + 1
    Wo = (W + 2 * pad - k) // stride + 1
    xp = jnp.pad(x_nhwc, ((0, 0), (pad, pad), (pad, pad), (0, 0)))
    patches = [
        xp[:, ki:ki + stride * Ho:stride, kj:kj + stride * Wo:stride, :]
        for ki in range(k) for kj in range(k)
    ]
    X = jnp.concatenate(patches, axis=-1)              # [N, Ho, Wo, k*k*C], channel-minor
    return X.reshape(N * Ho * Wo, k * k * C), Ho, Wo
    # TODO(synk): patch extraction could be fused into the matmul kernel via pl.ds
    #             windows on a pl.ANY HBM ref to avoid the 9x im2col materialization.


def _conv_relu(x_nhwc, w, b, stride=2, pad=1):
    # w: [C_out, C_in, k, k] (PyTorch layout), b: [C_out]
    c_out, c_in, k, _ = w.shape
    X, Ho, Wo = _im2col_nhwc(x_nhwc.astype(jnp.bfloat16), k, stride, pad)
    wm = jnp.transpose(w, (2, 3, 1, 0)).reshape(k * k * c_in, c_out)   # matches (ki,kj,c)
    y = matmul_bias_relu(X, wm, b)                      # Pallas hot path (f32 out)
    return y.reshape(x_nhwc.shape[0], Ho, Wo, c_out)    # stays NHWC between layers


def encoder(params, x_nchw):
    x = jnp.transpose(x_nchw, (0, 2, 3, 1))             # NCHW -> NHWC once
    x = _conv_relu(x, params['w1'], params['b1'], stride=2, pad=1)
    x = _conv_relu(x, params['w2'], params['b2'], stride=2, pad=1)
    return jnp.transpose(x, (0, 3, 1, 2))               # back to NCHW at module boundary


_encoder_jit = jax.jit(encoder)


# ----------------------------------------------------------------------------------
# FewShotSeg forward
# ----------------------------------------------------------------------------------
def get_features(fts, mask_np):
    """fts: [1, C, h, w] device f32; mask_np: [1, H, W] numpy -> [1, C, N_positive].

    Equivalent to F.interpolate(fts, (H, W), mode='bilinear') followed by gathering the
    nonzero mask positions, fused into one Pallas matmul against per-position separable
    bilinear weights, so the [C, H, W] upsampled tensor never exists.
    """
    _, C, h, w = fts.shape
    H, W = int(mask_np.shape[-2]), int(mask_np.shape[-1])
    # TODO(synk): torch.nonzero has a data-dependent output shape, so positive positions
    #             must be computed host-side on the concrete mask (un-jittable boundary).
    pos = np.nonzero(mask_np)
    ys, xs = pos[-2], pos[-1]
    n_pos = int(ys.shape[0])
    if n_pos == 0:
        return jnp.zeros((1, C, 0), jnp.float32)

    Ah = _bilinear_matrix(H, h)                          # cached numpy [H, h]
    Aw = _bilinear_matrix(W, w)                          # cached numpy [W, w]
    # G[p, i*w + j] = Ah[ys[p], i] * Aw[xs[p], j]  (separable bilinear weights)
    G = (Ah[ys][:, :, None] * Aw[xs][:, None, :]).reshape(n_pos, h * w)

    TN = 512 if n_pos > 512 else 128
    n_pad = _round_up(n_pos, TN)                         # lane-dense output columns
    g_t = np.zeros((h * w, n_pad), np.float32)
    g_t[:, :n_pos] = G.T

    out = gather_matmul(fts[0].reshape(C, h * w), jnp.asarray(g_t), tn=TN)
    return out[:C, :n_pos][None]                         # [1, C, N_pos]


def fewshot_forward(params, supp_imgs, fore_mask, back_mask, qry_imgs):
    n_ways = len(supp_imgs)
    n_shots = len(supp_imgs[0])
    n_queries = len(qry_imgs)
    batch_size = supp_imgs[0][0].shape[0]

    imgs_concat = jnp.concatenate(
        [jnp.concatenate(way, axis=0) for way in supp_imgs]
        + [jnp.concatenate(qry_imgs, axis=0)], axis=0)
    img_fts = _encoder_jit(params, imgs_concat)           # [N_total, C, h, w]
    fts_size = img_fts.shape[-2:]

    supp_fts = img_fts[:n_ways * n_shots * batch_size].reshape(
        n_ways, n_shots, batch_size, -1, *fts_size)
    qry_fts = img_fts[n_ways * n_shots * batch_size:].reshape(
        n_queries, batch_size, -1, *fts_size)

    # Masks move to host once (concrete data); avoids a device->host sync per call.
    fore_np = np.stack([np.stack([np.asarray(m) for m in way], 0) for way in fore_mask], 0)
    back_np = np.stack([np.stack([np.asarray(m) for m in way], 0) for way in back_mask], 0)

    supp_fg_fts = supp_bg_fts = None
    # NB: reference code overwrites these every episode; only the last epi survives.
    for epi in range(batch_size):
        supp_fg_fts = [[get_features(supp_fts[way, shot, epi:epi + 1],
                                     fore_np[way, shot, epi:epi + 1])
                        for shot in range(n_shots)] for way in range(n_ways)]
        supp_bg_fts = [[get_features(supp_fts[way, shot, epi:epi + 1],
                                     back_np[way, shot, epi:epi + 1])
                        for shot in range(n_shots)] for way in range(n_ways)]
    return supp_fg_fts, supp_bg_fts, qry_fts


# ----------------------------------------------------------------------------------
if __name__ == "__main__":
    key = jax.random.PRNGKey(0)
    k1, k2, k3, k4, k5 = jax.random.split(key, 5)

    C_MID, C_OUT = 16, 32      # config['output_feature_length'] = 32
    params = {
        'w1': 0.1 * jax.random.normal(k1, (C_MID, 3, 3, 3), jnp.float32),
        'b1': 0.01 * jax.random.normal(k2, (C_MID,), jnp.float32),
        'w2': 0.1 * jax.random.normal(k3, (C_OUT, C_MID, 3, 3), jnp.float32),
        'b2': 0.01 * jax.random.normal(k4, (C_OUT,), jnp.float32),
    }

    n_ways, n_shots, n_queries = 2, 1, 1
    B, H, W = 2, 16, 16

    supp_imgs = [[jax.random.normal(jax.random.fold_in(k5, 10 * way + shot),
                                    (B, 3, H, W), jnp.float32)
                  for shot in range(n_shots)] for way in range(n_ways)]
    qry_imgs = [jax.random.normal(jax.random.fold_in(k5, 100 + q),
                                  (B, 3, H, W), jnp.float32)
                for q in range(n_queries)]
    fore_mask = [[jnp.zeros((B, H, W), jnp.float32).at[:, 2 + way:10 + way, 3:12].set(1.0)
                  for _ in range(n_shots)] for way in range(n_ways)]
    back_mask = [[1.0 - fore_mask[way][shot]
                  for shot in range(n_shots)] for way in range(n_ways)]

    supp_fg_fts, supp_bg_fts, qry_fts = fewshot_forward(
        params, supp_imgs, fore_mask, back_mask, qry_imgs)

    jax.block_until_ready((supp_fg_fts, supp_bg_fts, qry_fts))
    assert qry_fts.shape == (n_queries, B, C_OUT, H // 4, W // 4)
    assert supp_fg_fts[0][0].shape[0] == 1 and supp_fg_fts[0][0].shape[1] == C_OUT
    assert supp_fg_fts[0][0].shape[2] == 8 * 9          # 72 positive pixels per mask
    assert supp_bg_fts[0][0].shape[2] == H * W - 8 * 9
    print("KERNEL_OK")
</pallas_src>

<mosaic_0001>
module attributes {stable_mosaic.version = 11 : i64} {
  func.func @_matmul_bias_relu_kernel(%arg0: i32, %arg1: memref<512x27xbf16, #tpu.memory_space<vmem>>, %arg2: memref<27x128xbf16, #tpu.memory_space<vmem>>, %arg3: memref<1x128xf32, #tpu.memory_space<vmem>>, %arg4: memref<512x128xf32, #tpu.memory_space<vmem>>) attributes {dimension_semantics = [#tpu.dimension_semantics<parallel>], iteration_bounds = array<i64: 1>, scalar_prefetch = 0 : i64, scratch_operands = 0 : i64, tpu.core_type = #tpu.core_type<tc>, window_params = [{transform_indices = @transform_0, window_bounds = array<i64: 512, 27>}, {pipeline_mode = #tpu.pipeline_mode<synchronous>, transform_indices = @transform_1, window_bounds = array<i64: 27, 128>}, {pipeline_mode = #tpu.pipeline_mode<synchronous>, transform_indices = @transform_2, window_bounds = array<i64: 1, 128>}, {transform_indices = @transform_3, window_bounds = array<i64: 512, 128>}]} {
    %c0 = arith.constant 0 : index
    %c0_0 = arith.constant 0 : index
    %0 = vector.load %arg1[%c0, %c0_0] : memref<512x27xbf16, #tpu.memory_space<vmem>>, vector<512x27xbf16>
    %c0_1 = arith.constant 0 : index
    %c0_2 = arith.constant 0 : index
    %1 = vector.load %arg2[%c0_1, %c0_2] : memref<27x128xbf16, #tpu.memory_space<vmem>>, vector<27x128xbf16>
    %cst = arith.constant dense<0.000000e+00> : vector<512x128xf32>
    %2 = tpu.matmul %0, %1, %cst {dimension_numbers = #tpu.dot_dimension_numbers<[1], [0], [0], [1], [0, 0, 1, 1], [], []>} : vector<512x27xbf16>, vector<27x128xbf16>, vector<512x128xf32> -> vector<512x128xf32>
    %c0_3 = arith.constant 0 : index
    %c0_4 = arith.constant 0 : index
    %3 = vector.load %arg3[%c0_3, %c0_4] : memref<1x128xf32, #tpu.memory_space<vmem>>, vector<1x128xf32>
    %4 = vector.broadcast %3 : vector<1x128xf32> to vector<512x128xf32>
    %5 = arith.addf %2, %4 : vector<512x128xf32>
    %cst_5 = arith.constant 0.000000e+00 : f32
    %6 = vector.broadcast %cst_5 : f32 to vector<512x128xf32>
    %7 = arith.maximumf %5, %6 : vector<512x128xf32>
    %c0_6 = arith.constant 0 : index
    %c0_7 = arith.constant 0 : index
    %8 = vector.load %arg4[%c0_6, %c0_7] : memref<512x128xf32, #tpu.memory_space<vmem>>, vector<512x128xf32>
    tpu.vector_store %arg4[%c0_6, %c0_7], %7 {strides = array<i32>} : memref<512x128xf32, #tpu.memory_space<vmem>>, vector<512x128xf32>,
    return
  }
  func.func @transform_0(%arg0: i32) -> (i32, i32) {
    %c0_i32 = arith.constant 0 : i32
    %c0_i32_0 = arith.constant 0 : i32
    return %arg0, %c0_i32 : i32, i32
  }
  func.func @transform_1(%arg0: i32) -> (i32, i32) {
    %c0_i32 = arith.constant 0 : i32
    %c0_i32_0 = arith.constant 0 : i32
    %c0_i32_1 = arith.constant 0 : i32
    return %c0_i32, %c0_i32_0 : i32, i32
  }
  func.func @transform_2(%arg0: i32) -> (i32, i32) {
    %c0_i32 = arith.constant 0 : i32
    %c0_i32_0 = arith.constant 0 : i32
    %c0_i32_1 = arith.constant 0 : i32
    return %c0_i32, %c0_i32_0 : i32, i32
  }
  func.func @transform_3(%arg0: i32) -> (i32, i32) {
    %c0_i32 = arith.constant 0 : i32
    %c0_i32_0 = arith.constant 0 : i32
    return %arg0, %c0_i32 : i32, i32
  }
}

module attributes {stable_mosaic.version = 11 : i64} {
  func.func @_matmul_bias_relu_kernel(%arg0: i32, %arg1: memref<256x144xbf16, #tpu.memory_space<vmem>>, %arg2: memref<144x128xbf16, #tpu.memory_space<vmem>>, %arg3: memref<1x128xf32, #tpu.memory_space<vmem>>, %arg4: memref<256x128xf32, #tpu.memory_space<vmem>>) attributes {dimension_semantics = [#tpu.dimension_semantics<parallel>], iteration_bounds = array<i64: 1>, scalar_prefetch = 0 : i64, scratch_operands = 0 : i64, tpu.core_type = #tpu.core_type<tc>, window_params = [{transform_indices = @transform_0, window_bounds = array<i64: 256, 144>}, {pipeline_mode = #tpu.pipeline_mode<synchronous>, transform_indices = @transform_1, window_bounds = array<i64: 144, 128>}, {pipeline_mode = #tpu.pipeline_mode<synchronous>, transform_indices = @transform_2, window_bounds = array<i64: 1, 128>}, {transform_indices = @transform_3, window_bounds = array<i64: 256, 128>}]} {
    %c0 = arith.constant 0 : index
    %c0_0 = arith.constant 0 : index
    %0 = vector.load %arg1[%c0, %c0_0] : memref<256x144xbf16, #tpu.memory_space<vmem>>, vector<256x144xbf16>
    %c0_1 = arith.constant 0 : index
    %c0_2 = arith.constant 0 : index
    %1 = vector.load %arg2[%c0_1, %c0_2] : memref<144x128xbf16, #tpu.memory_space<vmem>>, vector<144x128xbf16>
    %cst = arith.constant dense<0.000000e+00> : vector<256x128xf32>
    %2 = tpu.matmul %0, %1, %cst {dimension_numbers = #tpu.dot_dimension_numbers<[1], [0], [0], [1], [0, 0, 1, 1], [], []>} : vector<256x144xbf16>, vector<144x128xbf16>, vector<256x128xf32> -> vector<256x128xf32>
    %c0_3 = arith.constant 0 : index
    %c0_4 = arith.constant 0 : index
    %3 = vector.load %arg3[%c0_3, %c0_4] : memref<1x128xf32, #tpu.memory_space<vmem>>, vector<1x128xf32>
    %4 = vector.broadcast %3 : vector<1x128xf32> to vector<256x128xf32>
    %5 = arith.addf %2, %4 : vector<256x128xf32>
    %cst_5 = arith.constant 0.000000e+00 : f32
    %6 = vector.broadcast %cst_5 : f32 to vector<256x128xf32>
    %7 = arith.maximumf %5, %6 : vector<256x128xf32>
    %c0_6 = arith.constant 0 : index
    %c0_7 = arith.constant 0 : index
    %8 = vector.load %arg4[%c0_6, %c0_7] : memref<256x128xf32, #tpu.memory_space<vmem>>, vector<256x128xf32>
    tpu.vector_store %arg4[%c0_6, %c0_7], %7 {strides = array<i32>} : memref<256x128xf32, #tpu.memory_space<vmem>>, vector<256x128xf32>,
    return
  }
  func.func @transform_0(%arg0: i32) -> (i32, i32) {
    %c0_i32 = arith.constant 0 : i32
    %c0_i32_0 = arith.constant 0 : i32
    return %arg0, %c0_i32 : i32, i32
  }
  func.func @transform_1(%arg0: i32) -> (i32, i32) {
    %c0_i32 = arith.constant 0 : i32
    %c0_i32_0 = arith.constant 0 : i32
    %c0_i32_1 = arith.constant 0 : i32
    return %c0_i32, %c0_i32_0 : i32, i32
  }
  func.func @transform_2(%arg0: i32) -> (i32, i32) {
    %c0_i32 = arith.constant 0 : i32
    %c0_i32_0 = arith.constant 0 : i32
    %c0_i32_1 = arith.constant 0 : i32
    return %c0_i32, %c0_i32_0 : i32, i32
  }
  func.func @transform_3(%arg0: i32) -> (i32, i32) {
    %c0_i32 = arith.constant 0 : i32
    %c0_i32_0 = arith.constant 0 : i32
    return %arg0, %c0_i32 : i32, i32
  }
}

</mosaic_0001>

<bundles_post_ra>
// kernel: encoder.2
= control target key start
LH: loop header
LB: loop body
LE: loop exit
PB: predicated region body
PF: predicated region fallthrough
CT: control target
= control target key end

     0   :  { %vm358_vm0 = vcmask 1044480   ;;  %vm359_vm1 = vcmask 1045504   ;;  %vm261_vm2 = vcmask 220160   ;;  %v994_v1 = vmov 65535   ;;  %s1410_s1 = inlined_call_operand.vmem [shape: bf16[27,128], index: 1, kind: input, shape index: {}]   ;;  %s1411_s0 = inlined_call_operand.vmem [shape: bf16[512,27], index: 0, kind: input, shape index: {}]   ;;  %s1412_s2 = inlined_call_operand.vmem [shape: f32[1,128], index: 2, kind: input, shape index: {}]   ;;  %s1413_s3 = inlined_call_operand.vmem [shape: f32[512,128], index: 3, kind: output, shape index: {}]  }
   0x1   :  { %v960_v0 = vld [vmem:[%s1410_s1] sm:$0xff]   ;;  %v360_v2 = vsel %vm358_vm0, 4294967295, %v994_v1  ;;  %v961_v3 = vld [vmem:[%s1410_s1 + $0x8] sm:$0x3f]   ;;  %v966_v10 = vld [vmem:[%s1411_s0 + $0x10] sm:$0xff]  }
   0x2   :  { %887 = vmatprep.subr.bf16.mxu0 %v960_v0  ;;  %955 = vmatprep.subr.bf16.mxu1 %v960_v0  ;;  %v361_v4 = vsel %vm359_vm1, %v360_v2, 0  ;;  %v962_v5 = vld [vmem:[%s1411_s0] sm:$0xff]   ;;  %v964_v8 = vld [vmem:[%s1411_s0 + $0x8] sm:$0xff]   ;;  %v967_v11 = vld [vmem:[%s1411_s0 + $0x90] sm:$0xff]  }
   0x3   :  { %888 = vmatpush3.bf16.msra.mxu0 %v960_v0  ;;  %957 = vmatpush3.bf16.msra.mxu1 %v960_v0  ;;  %v363_v6 = vand.u32 %v961_v3, %v361_v4  ;;  %v963_v7 = vld [vmem:[%s1411_s0 + $0x80] sm:$0xff]   ;;  %v965_v9 = vld [vmem:[%s1411_s0 + $0x88] sm:$0xff]   ;;  %v968_v12 = vld [vmem:[%s1411_s0 + $0x18] sm:$0xff]  }
   0x4   :  { %891 = vmatprep.mubr.msk.bf16.mxu0 %vm261_vm2, %v962_v5  ;;  %923 = vmatprep.mubr.msk.bf16.mxu1 %vm261_vm2, %v963_v7  ;;  %v969_v13 = vld [vmem:[%s1411_s0 + $0x98] sm:$0xff]   ;;  %v970_v14 = vld [vmem:[%s1411_s0 + $0x20] sm:$0xff]   ;;  %v972_v16 = vld [vmem:[%s1411_s0 + $0x28] sm:$0xff]  }
   0x5   :  { %889 = vmatprep.subr.bf16.mxu0 %v363_v6  ;;  %956 = vmatprep.subr.bf16.mxu1 %v363_v6  ;;  %v971_v15 = vld [vmem:[%s1411_s0 + $0xa0] sm:$0xff]   ;;  %v973_v17 = vld [vmem:[%s1411_s0 + $0xa8] sm:$0xff]   ;;  %v974_v18 = vld [vmem:[%s1411_s0 + $0x30] sm:$0xff]  }
   0x6   :  { %v975_v19 = vld [vmem:[%s1411_s0 + $0xb0] sm:$0xff]   ;;  %v976_v20 = vld [vmem:[%s1411_s0 + $0x38] sm:$0xff]   ;;  %v978_v22 = vld [vmem:[%s1411_s0 + $0x40] sm:$0xff]  }
   0x7   :  { %890 = vmatpush3.bf16.msra.mxu0 %v363_v6  ;;  %958 = vmatpush3.bf16.msra.mxu1 %v363_v6  ;;  %v977_v21 = vld [vmem:[%s1411_s0 + $0xb8] sm:$0xff]   ;;  %v979_v23 = vld [vmem:[%s1411_s0 + $0xc0] sm:$0xff]   ;;  %v980_v24 = vld [vmem:[%s1411_s0 + $0x48] sm:$0xff]  }
   0x8   :  { %v981_v25 = vld [vmem:[%s1411_s0 + $0xc8] sm:$0xff]   ;;  %v982_v26 = vld [vmem:[%s1411_s0 + $0x50] sm:$0xff]   ;;  %v984_v28 = vld [vmem:[%s1411_s0 + $0x58] sm:$0xff]  }
   0x9   :  { %v983_v27 = vld [vmem:[%s1411_s0 + $0xd0] sm:$0xff]   ;;  %v985_v29 = vld [vmem:[%s1411_s0 + $0xd8] sm:$0xff]   ;;  %v986_v30 = vld [vmem:[%s1411_s0 + $0x60] sm:$0xff]  }
   0xa   :  { %892 = vmatmul.mubr.msk.bf16.vlgmr.msra.gmra.mrb[0].mxu0 %vm261_vm2, %v964_v8  ;;  %924 = vmatmul.mubr.msk.bf16.vlgmr.msra.gmra.mrb[0].mxu1 %vm261_vm2, %v965_v9  ;;  %v987_v31 = vld [vmem:[%s1411_s0 + $0xe0] sm:$0xff]   ;;  %v988_v32 = vld [vmem:[%s1411_s0 + $0x68] sm:$0xff]   ;;  %v990_v34 = vld [vmem:[%s1411_s0 + $0x70] sm:$0xff]  }
   0xb   :  { %895 = vmatprep.mubr.msk.bf16.mxu0 %vm261_vm2, %v966_v10  ;;  %927 = vmatprep.mubr.msk.bf16.mxu1 %vm261_vm2, %v967_v11  ;;  %v989_v33 = vld [vmem:[%s1411_s0 + $0xe8] sm:$0xff]   ;;  %v991_v35 = vld [vmem:[%s1411_s0 + $0xf0] sm:$0xff]   ;;  %v992_v36 = vld [vmem:[%s1411_s0 + $0x78] sm:$0xff]  }
   0xc   :  { %v993_v37 = vld [vmem:[%s1411_s0 + $0xf8] sm:$0xff]   ;;  %v1152_v38 = vld [vmem:[%s1412_s2] ss:$0 sm:$0xff] }
  0x12   :  { %896 = vmatmul.mubr.msk.bf16.gmra.mrb[4].mxu0 %vm261_vm2, %v968_v12  ;;  %928 = vmatmul.mubr.msk.bf16.gmra.mrb[4].mxu1 %vm261_vm2, %v969_v13 }
  0x13   :  { %899 = vmatprep.mubr.msk.bf16.mxu0 %vm261_vm2, %v970_v14  ;;  %931 = vmatprep.mubr.msk.bf16.mxu1 %vm261_vm2, %v971_v15 }
  0x1a   :  { %900 = vmatmul.mubr.msk.bf16.gmra.mrb[8].mxu0 %vm261_vm2, %v972_v16  ;;  %932 = vmatmul.mubr.msk.bf16.gmra.mrb[8].mxu1 %vm261_vm2, %v973_v17 }
  0x1b   :  { %903 = vmatprep.mubr.msk.bf16.mxu0 %vm261_vm2, %v974_v18  ;;  %935 = vmatprep.mubr.msk.bf16.mxu1 %vm261_vm2, %v975_v19 }
  0x22   :  { %904 = vmatmul.mubr.msk.bf16.gmra.mrb[12].mxu0 %vm261_vm2, %v976_v20  ;;  %936 = vmatmul.mubr.msk.bf16.gmra.mrb[12].mxu1 %vm261_vm2, %v977_v21 }
  0x23   :  { %907 = vmatprep.mubr.msk.bf16.mxu0 %vm261_vm2, %v978_v22  ;;  %939 = vmatprep.mubr.msk.bf16.mxu1 %vm261_vm2, %v979_v23 }
  0x2a   :  { %908 = vmatmul.mubr.msk.bf16.gmra.mrb[16].mxu0 %vm261_vm2, %v980_v24  ;;  %940 = vmatmul.mubr.msk.bf16.gmra.mrb[16].mxu1 %vm261_vm2, %v981_v25 }
  0x2b   :  { %911 = vmatprep.mubr.msk.bf16.mxu0 %vm261_vm2, %v982_v26  ;;  %943 = vmatprep.mubr.msk.bf16.mxu1 %vm261_vm2, %v983_v27 }
  0x32   :  { %912 = vmatmul.mubr.msk.bf16.gmra.mrb[20].mxu0 %vm261_vm2, %v984_v28  ;;  %944 = vmatmul.mubr.msk.bf16.gmra.mrb[20].mxu1 %vm261_vm2, %v985_v29 }
  0x33   :  { %915 = vmatprep.mubr.msk.bf16.mxu0 %vm261_vm2, %v986_v30  ;;  %947 = vmatprep.mubr.msk.bf16.mxu1 %vm261_vm2, %v987_v31 }
  0x3a   :  { %916 = vmatmul.mubr.msk.bf16.gmra.mrb[24].mxu0 %vm261_vm2, %v988_v32  ;;  %948 = vmatmul.mubr.msk.bf16.gmra.mrb[24].mxu1 %vm261_vm2, %v989_v33 }
  0x3b   :  { %919 = vmatprep.mubr.msk.bf16.mxu0 %vm261_vm2, %v990_v34  ;;  %951 = vmatprep.mubr.msk.bf16.mxu1 %vm261_vm2, %v991_v35 }
  0x42   :  { %920 = vmatmul.mubr.msk.bf16.gmra.mrb[28].mxu0 %vm261_vm2, %v992_v36  ;;  %952 = vmatmul.mubr.msk.bf16.gmra.mrb[28].mxu1 %vm261_vm2, %v993_v37 }
  0xdd   :  { %v893_v39 = vpop.f32.mrb[0].mxu0  ;;  %v925_v40 = vpop.f32.mrb[0].mxu1 }
  0xde   :  { %v408_v41 = vadd.f32 %v893_v39, %v1152_v38  ;;  %v536_v42 = vadd.f32 %v925_v40, %v1152_v38  ;;  %v399_v43 = vpop.f32.mrb[1].mxu0  ;;  %v527_v44 = vpop.f32.mrb[1].mxu1 }
  0xdf   :  { %v400_v45 = vadd.f32 %v1152_v38, %v399_v43  ;;  %v528_v46 = vadd.f32 %v1152_v38, %v527_v44  ;;  %v894_v47 = vpop.f32.mrb[2].mxu0  ;;  %v926_v48 = vpop.f32.mrb[2].mxu1 }
  0xe0   :  { %v656_v49 = vmax.f32 %v408_v41, 0.0  ;;  %v688_v50 = vmax.f32 %v536_v42, 0.0  ;;  %v411_v51 = vadd.f32 %v894_v47, %v1152_v38  ;;  %v539_v52 = vadd.f32 %v926_v48, %v1152_v38  ;;  %v402_v53 = vpop.f32.mrb[3].mxu0  ;;  %v530_v54 = vpop.f32.mrb[3].mxu1 }
  0xe1   :  { %v654_v55 = vmax.f32 %v400_v45, 0.0  ;;  %v686_v56 = vmax.f32 %v528_v46, 0.0  ;;  %v403_v57 = vadd.f32 %v1152_v38, %v402_v53  ;;  %v531_v58 = vadd.f32 %v1152_v38, %v530_v54 }
  0xe2   :  { %720 = vst [vmem:[%s1413_s3 + $0x10] sm:$0xff] %v656_v49  ;;  %752 = vst [vmem:[%s1413_s3 + $0x110] sm:$0xff] %v688_v50  ;;  %v657_v59 = vmax.f32 %v411_v51, 0.0  ;;  %v689_v60 = vmax.f32 %v539_v52, 0.0 }
  0xe3   :  { %718 = vst [vmem:[%s1413_s3] sm:$0xff] %v654_v55  ;;  %750 = vst [vmem:[%s1413_s3 + $0x100] sm:$0xff] %v686_v56  ;;  %v655_v61 = vmax.f32 %v403_v57, 0.0  ;;  %v687_v62 = vmax.f32 %v531_v58, 0.0 }
  0xe4   :  { %721 = vst [vmem:[%s1413_s3 + $0x18] sm:$0xff] %v657_v59  ;;  %753 = vst [vmem:[%s1413_s3 + $0x118] sm:$0xff] %v689_v60 }
  0xe5   :  { %719 = vst [vmem:[%s1413_s3 + $0x8] sm:$0xff] %v655_v61  ;;  %751 = vst [vmem:[%s1413_s3 + $0x108] sm:$0xff] %v687_v62  ;;  %v897_v63 = vpop.f32.mrb[4].mxu0  ;;  %v929_v0 = vpop.f32.mrb[4].mxu1 }
  0xe6   :  { %v424_v1 = vadd.f32 %v897_v63, %v1152_v38  ;;  %v552_v2 = vadd.f32 %v929_v0, %v1152_v38  ;;  %v415_v3 = vpop.f32.mrb[5].mxu0  ;;  %v543_v4 = vpop.f32.mrb[5].mxu1 }
  0xe7   :  { %v416_v5 = vadd.f32 %v1152_v38, %v415_v3  ;;  %v544_v6 = vadd.f32 %v1152_v38, %v543_v4  ;;  %v898_v7 = vpop.f32.mrb[6].mxu0  ;;  %v930_v8 = vpop.f32.mrb[6].mxu1 }
  0xe8   :  { %v660_v9 = vmax.f32 %v424_v1, 0.0  ;;  %v692_v10 = vmax.f32 %v552_v2, 0.0  ;;  %v427_v11 = vadd.f32 %v898_v7, %v1152_v38  ;;  %v555_v12 = vadd.f32 %v930_v8, %v1152_v38  ;;  %v418_v13 = vpop.f32.mrb[7].mxu0  ;;  %v546_v14 = vpop.f32.mrb[7].mxu1 }
  0xe9   :  { %v658_v15 = vmax.f32 %v416_v5, 0.0  ;;  %v690_v16 = vmax.f32 %v544_v6, 0.0  ;;  %v419_v17 = vadd.f32 %v1152_v38, %v418_v13  ;;  %v547_v18 = vadd.f32 %v1152_v38, %v546_v14 }
  0xea   :  { %724 = vst [vmem:[%s1413_s3 + $0x30] sm:$0xff] %v660_v9  ;;  %756 = vst [vmem:[%s1413_s3 + $0x130] sm:$0xff] %v692_v10  ;;  %v661_v19 = vmax.f32 %v427_v11, 0.0  ;;  %v693_v20 = vmax.f32 %v555_v12, 0.0 }
  0xeb   :  { %722 = vst [vmem:[%s1413_s3 + $0x20] sm:$0xff] %v658_v15  ;;  %754 = vst [vmem:[%s1413_s3 + $0x120] sm:$0xff] %v690_v16  ;;  %v659_v21 = vmax.f32 %v419_v17, 0.0  ;;  %v691_v22 = vmax.f32 %v547_v18, 0.0 }
  0xec   :  { %725 = vst [vmem:[%s1413_s3 + $0x38] sm:$0xff] %v661_v19  ;;  %757 = vst [vmem:[%s1413_s3 + $0x138] sm:$0xff] %v693_v20 }
  0xed   :  { %723 = vst [vmem:[%s1413_s3 + $0x28] sm:$0xff] %v659_v21  ;;  %755 = vst [vmem:[%s1413_s3 + $0x128] sm:$0xff] %v691_v22  ;;  %v901_v23 = vpop.f32.mrb[8].mxu0  ;;  %v933_v24 = vpop.f32.mrb[8].mxu1 }
  0xee   :  { %v440_v25 = vadd.f32 %v901_v23, %v1152_v38  ;;  %v568_v26 = vadd.f32 %v933_v24, %v1152_v38  ;;  %v431_v27 = vpop.f32.mrb[9].mxu0  ;;  %v559_v28 = vpop.f32.mrb[9].mxu1 }
  0xef   :  { %v432_v29 = vadd.f32 %v1152_v38, %v431_v27  ;;  %v560_v30 = vadd.f32 %v1152_v38, %v559_v28  ;;  %v902_v31 = vpop.f32.mrb[10].mxu0  ;;  %v934_v32 = vpop.f32.mrb[10].mxu1 }
  0xf0   :  { %v664_v33 = vmax.f32 %v440_v25, 0.0  ;;  %v696_v34 = vmax.f32 %v568_v26, 0.0  ;;  %v443_v35 = vadd.f32 %v902_v31, %v1152_v38  ;;  %v571_v36 = vadd.f32 %v934_v32, %v1152_v38  ;;  %v434_v37 = vpop.f32.mrb[11].mxu0  ;;  %v562_v39 = vpop.f32.mrb[11].mxu1 }
  0xf1   :  { %v662_v40 = vmax.f32 %v432_v29, 0.0  ;;  %v694_v41 = vmax.f32 %v560_v30, 0.0  ;;  %v435_v42 = vadd.f32 %v1152_v38, %v434_v37  ;;  %v563_v43 = vadd.f32 %v1152_v38, %v562_v39 }
  0xf2   :  { %728 = vst [vmem:[%s1413_s3 + $0x50] sm:$0xff] %v664_v33  ;;  %760 = vst [vmem:[%s1413_s3 + $0x150] sm:$0xff] %v696_v34  ;;  %v665_v44 = vmax.f32 %v443_v35, 0.0  ;;  %v697_v45 = vmax.f32 %v571_v36, 0.0 }
  0xf3   :  { %726 = vst [vmem:[%s1413_s3 + $0x40] sm:$0xff] %v662_v40  ;;  %758 = vst [vmem:[%s1413_s3 + $0x140] sm:$0xff] %v694_v41  ;;  %v663_v46 = vmax.f32 %v435_v42, 0.0  ;;  %v695_v47 = vmax.f32 %v563_v43, 0.0 }
  0xf4   :  { %729 = vst [vmem:[%s1413_s3 + $0x58] sm:$0xff] %v665_v44  ;;  %761 = vst [vmem:[%s1413_s3 + $0x158] sm:$0xff] %v697_v45 }
  0xf5   :  { %727 = vst [vmem:[%s1413_s3 + $0x48] sm:$0xff] %v663_v46  ;;  %759 = vst [vmem:[%s1413_s3 + $0x148] sm:$0xff] %v695_v47  ;;  %v905_v48 = vpop.f32.mrb[12].mxu0  ;;  %v937_v49 = vpop.f32.mrb[12].mxu1 }
  0xf6   :  { %v456_v50 = vadd.f32 %v905_v48, %v1152_v38  ;;  %v584_v51 = vadd.f32 %v937_v49, %v1152_v38  ;;  %v447_v52 = vpop.f32.mrb[13].mxu0  ;;  %v575_v53 = vpop.f32.mrb[13].mxu1 }
  0xf7   :  { %v448_v54 = vadd.f32 %v1152_v38, %v447_v52  ;;  %v576_v55 = vadd.f32 %v1152_v38, %v575_v53  ;;  %v906_v56 = vpop.f32.mrb[14].mxu0  ;;  %v938_v57 = vpop.f32.mrb[14].mxu1 }
  0xf8   :  { %v668_v58 = vmax.f32 %v456_v50, 0.0  ;;  %v700_v59 = vmax.f32 %v584_v51, 0.0  ;;  %v459_v60 = vadd.f32 %v906_v56, %v1152_v38  ;;  %v587_v61 = vadd.f32 %v938_v57, %v1152_v38  ;;  %v450_v62 = vpop.f32.mrb[15].mxu0  ;;  %v578_v63 = vpop.f32.mrb[15].mxu1 }
  0xf9   :  { %v666_v0 = vmax.f32 %v448_v54, 0.0  ;;  %v698_v1 = vmax.f32 %v576_v55, 0.0  ;;  %v451_v2 = vadd.f32 %v1152_v38, %v450_v62  ;;  %v579_v3 = vadd.f32 %v1152_v38, %v578_v63 }
  0xfa   :  { %732 = vst [vmem:[%s1413_s3 + $0x70] sm:$0xff] %v668_v58  ;;  %764 = vst [vmem:[%s1413_s3 + $0x170] sm:$0xff] %v700_v59  ;;  %v669_v4 = vmax.f32 %v459_v60, 0.0  ;;  %v701_v5 = vmax.f32 %v587_v61, 0.0 }
  0xfb   :  { %730 = vst [vmem:[%s1413_s3 + $0x60] sm:$0xff] %v666_v0  ;;  %762 = vst [vmem:[%s1413_s3 + $0x160] sm:$0xff] %v698_v1  ;;  %v667_v6 = vmax.f32 %v451_v2, 0.0  ;;  %v699_v7 = vmax.f32 %v579_v3, 0.0 }
  0xfc   :  { %733 = vst [vmem:[%s1413_s3 + $0x78] sm:$0xff] %v669_v4  ;;  %765 = vst [vmem:[%s1413_s3 + $0x178] sm:$0xff] %v701_v5 }
  0xfd   :  { %731 = vst [vmem:[%s1413_s3 + $0x68] sm:$0xff] %v667_v6  ;;  %763 = vst [vmem:[%s1413_s3 + $0x168] sm:$0xff] %v699_v7  ;;  %v909_v8 = vpop.f32.mrb[16].mxu0  ;;  %v941_v9 = vpop.f32.mrb[16].mxu1 }
  0xfe   :  { %v472_v10 = vadd.f32 %v909_v8, %v1152_v38  ;;  %v600_v11 = vadd.f32 %v941_v9, %v1152_v38  ;;  %v463_v12 = vpop.f32.mrb[17].mxu0  ;;  %v591_v13 = vpop.f32.mrb[17].mxu1 }
  0xff   :  { %v464_v14 = vadd.f32 %v1152_v38, %v463_v12  ;;  %v592_v15 = vadd.f32 %v1152_v38, %v591_v13  ;;  %v910_v16 = vpop.f32.mrb[18].mxu0  ;;  %v942_v17 = vpop.f32.mrb[18].mxu1 }
 0x100   :  { %v672_v18 = vmax.f32 %v472_v10, 0.0  ;;  %v704_v19 = vmax.f32 %v600_v11, 0.0  ;;  %v475_v20 = vadd.f32 %v910_v16, %v1152_v38  ;;  %v603_v21 = vadd.f32 %v942_v17, %v1152_v38  ;;  %v466_v22 = vpop.f32.mrb[19].mxu0  ;;  %v594_v23 = vpop.f32.mrb[19].mxu1 }
 0x101   :  { %v670_v24 = vmax.f32 %v464_v14, 0.0  ;;  %v702_v25 = vmax.f32 %v592_v15, 0.0  ;;  %v467_v26 = vadd.f32 %v1152_v38, %v466_v22  ;;  %v595_v27 = vadd.f32 %v1152_v38, %v594_v23 }
 0x102   :  { %736 = vst [vmem:[%s1413_s3 + $0x90] sm:$0xff] %v672_v18  ;;  %768 = vst [vmem:[%s1413_s3 + $0x190] sm:$0xff] %v704_v19  ;;  %v673_v28 = vmax.f32 %v475_v20, 0.0  ;;  %v705_v29 = vmax.f32 %v603_v21, 0.0 }
 0x103   :  { %734 = vst [vmem:[%s1413_s3 + $0x80] sm:$0xff] %v670_v24  ;;  %766 = vst [vmem:[%s1413_s3 + $0x180] sm:$0xff] %v702_v25  ;;  %v671_v30 = vmax.f32 %v467_v26, 0.0  ;;  %v703_v31 = vmax.f32 %v595_v27, 0.0 }
 0x104   :  { %737 = vst [vmem:[%s1413_s3 + $0x98] sm:$0xff] %v673_v28  ;;  %769 = vst [vmem:[%s1413_s3 + $0x198] sm:$0xff] %v705_v29 }
 0x105   :  { %735 = vst [vmem:[%s1413_s3 + $0x88] sm:$0xff] %v671_v30  ;;  %767 = vst [vmem:[%s1413_s3 + $0x188] sm:$0xff] %v703_v31  ;;  %v913_v32 = vpop.f32.mrb[20].mxu0  ;;  %v945_v33 = vpop.f32.mrb[20].mxu1 }
 0x106   :  { %v488_v34 = vadd.f32 %v913_v32, %v1152_v38  ;;  %v616_v35 = vadd.f32 %v945_v33, %v1152_v38  ;;  %v479_v36 = vpop.f32.mrb[21].mxu0  ;;  %v607_v37 = vpop.f32.mrb[21].mxu1 }
 0x107   :  { %v480_v39 = vadd.f32 %v1152_v38, %v479_v36  ;;  %v608_v40 = vadd.f32 %v1152_v38, %v607_v37  ;;  %v914_v41 = vpop.f32.mrb[22].mxu0  ;;  %v946_v42 = vpop.f32.mrb[22].mxu1 }
 0x108   :  { %v676_v43 = vmax.f32 %v488_v34, 0.0  ;;  %v708_v44 = vmax.f32 %v616_v35, 0.0  ;;  %v491_v45 = vadd.f32 %v914_v41, %v1152_v38  ;;  %v619_v46 = vadd.f32 %v946_v42, %v1152_v38  ;;  %v482_v47 = vpop.f32.mrb[23].mxu0  ;;  %v610_v48 = vpop.f32.mrb[23].mxu1 }
 0x109   :  { %v674_v49 = vmax.f32 %v480_v39, 0.0  ;;  %v706_v50 = vmax.f32 %v608_v40, 0.0  ;;  %v483_v51 = vadd.f32 %v1152_v38, %v482_v47  ;;  %v611_v52 = vadd.f32 %v1152_v38, %v610_v48 }
 0x10a   :  { %740 = vst [vmem:[%s1413_s3 + $0xb0] sm:$0xff] %v676_v43  ;;  %772 = vst [vmem:[%s1413_s3 + $0x1b0] sm:$0xff] %v708_v44  ;;  %v677_v53 = vmax.f32 %v491_v45, 0.0  ;;  %v709_v54 = vmax.f32 %v619_v46, 0.0 }
 0x10b   :  { %738 = vst [vmem:[%s1413_s3 + $0xa0] sm:$0xff] %v674_v49  ;;  %770 = vst [vmem:[%s1413_s3 + $0x1a0] sm:$0xff] %v706_v50  ;;  %v675_v55 = vmax.f32 %v483_v51, 0.0  ;;  %v707_v56 = vmax.f32 %v611_v52, 0.0 }
 0x10c   :  { %741 = vst [vmem:[%s1413_s3 + $0xb8] sm:$0xff] %v677_v53  ;;  %773 = vst [vmem:[%s1413_s3 + $0x1b8] sm:$0xff] %v709_v54 }
 0x10d   :  { %739 = vst [vmem:[%s1413_s3 + $0xa8] sm:$0xff] %v675_v55  ;;  %771 = vst [vmem:[%s1413_s3 + $0x1a8] sm:$0xff] %v707_v56  ;;  %v917_v57 = vpop.f32.mrb[24].mxu0  ;;  %v949_v58 = vpop.f32.mrb[24].mxu1 }
 0x10e   :  { %v504_v59 = vadd.f32 %v917_v57, %v1152_v38  ;;  %v632_v60 = vadd.f32 %v949_v58, %v1152_v38  ;;  %v495_v61 = vpop.f32.mrb[25].mxu0  ;;  %v623_v62 = vpop.f32.mrb[25].mxu1 }
 0x10f   :  { %v496_v63 = vadd.f32 %v1152_v38, %v495_v61  ;;  %v624_v0 = vadd.f32 %v1152_v38, %v623_v62  ;;  %v918_v1 = vpop.f32.mrb[26].mxu0  ;;  %v950_v2 = vpop.f32.mrb[26].mxu1 }
 0x110   :  { %v680_v3 = vmax.f32 %v504_v59, 0.0  ;;  %v712_v4 = vmax.f32 %v632_v60, 0.0  ;;  %v507_v5 = vadd.f32 %v918_v1, %v1152_v38  ;;  %v635_v6 = vadd.f32 %v950_v2, %v1152_v38  ;;  %v498_v7 = vpop.f32.mrb[27].mxu0  ;;  %v626_v8 = vpop.f32.mrb[27].mxu1 }
 0x111   :  { %v678_v9 = vmax.f32 %v496_v63, 0.0  ;;  %v710_v10 = vmax.f32 %v624_v0, 0.0  ;;  %v499_v11 = vadd.f32 %v1152_v38, %v498_v7  ;;  %v627_v12 = vadd.f32 %v1152_v38, %v626_v8 }
 0x112   :  { %744 = vst [vmem:[%s1413_s3 + $0xd0] sm:$0xff] %v680_v3  ;;  %776 = vst [vmem:[%s1413_s3 + $0x1d0] sm:$0xff] %v712_v4  ;;  %v681_v13 = vmax.f32 %v507_v5, 0.0  ;;  %v713_v14 = vmax.f32 %v635_v6, 0.0 }
 0x113   :  { %742 = vst [vmem:[%s1413_s3 + $0xc0] sm:$0xff] %v678_v9  ;;  %774 = vst [vmem:[%s1413_s3 + $0x1c0] sm:$0xff] %v710_v10  ;;  %v679_v15 = vmax.f32 %v499_v11, 0.0  ;;  %v711_v16 = vmax.f32 %v627_v12, 0.0 }
 0x114   :  { %745 = vst [vmem:[%s1413_s3 + $0xd8] sm:$0xff] %v681_v13  ;;  %777 = vst [vmem:[%s1413_s3 + $0x1d8] sm:$0xff] %v713_v14 }
 0x115   :  { %743 = vst [vmem:[%s1413_s3 + $0xc8] sm:$0xff] %v679_v15  ;;  %775 = vst [vmem:[%s1413_s3 + $0x1c8] sm:$0xff] %v711_v16  ;;  %v921_v17 = vpop.f32.mrb[28].mxu0  ;;  %v953_v18 = vpop.f32.mrb[28].mxu1 }
 0x116   :  { %v520_v19 = vadd.f32 %v921_v17, %v1152_v38  ;;  %v648_v20 = vadd.f32 %v953_v18, %v1152_v38  ;;  %v511_v21 = vpop.f32.mrb[29].mxu0  ;;  %v639_v22 = vpop.f32.mrb[29].mxu1 }
 0x117   :  { %v512_v23 = vadd.f32 %v1152_v38, %v511_v21  ;;  %v640_v24 = vadd.f32 %v1152_v38, %v639_v22  ;;  %v922_v25 = vpop.f32.mrb[30].mxu0  ;;  %v954_v26 = vpop.f32.mrb[30].mxu1 }
 0x118   :  { %v684_v27 = vmax.f32 %v520_v19, 0.0  ;;  %v716_v28 = vmax.f32 %v648_v20, 0.0  ;;  %v523_v29 = vadd.f32 %v922_v25, %v1152_v38  ;;  %v651_v30 = vadd.f32 %v954_v26, %v1152_v38  ;;  %v514_v31 = vpop.f32.mrb[31].mxu0  ;;  %v642_v32 = vpop.f32.mrb[31].mxu1 }
 0x119   :  { %v682_v33 = vmax.f32 %v512_v23, 0.0  ;;  %v714_v34 = vmax.f32 %v640_v24, 0.0  ;;  %v515_v35 = vadd.f32 %v1152_v38, %v514_v31  ;;  %v643_v36 = vadd.f32 %v1152_v38, %v642_v32 }
 0x11a   :  { %748 = vst [vmem:[%s1413_s3 + $0xf0] sm:$0xff] %v684_v27  ;;  %780 = vst [vmem:[%s1413_s3 + $0x1f0] sm:$0xff] %v716_v28  ;;  %v685_v37 = vmax.f32 %v523_v29, 0.0  ;;  %v717_v39 = vmax.f32 %v651_v30, 0.0 }
 0x11b   :  { %746 = vst [vmem:[%s1413_s3 + $0xe0] sm:$0xff] %v682_v33  ;;  %778 = vst [vmem:[%s1413_s3 + $0x1e0] sm:$0xff] %v714_v34  ;;  %v683_v40 = vmax.f32 %v515_v35, 0.0  ;;  %v715_v38 = vmax.f32 %v643_v36, 0.0 }
 0x11c   :  { %749 = vst [vmem:[%s1413_s3 + $0xf8] sm:$0xff] %v685_v37  ;;  %781 = vst [vmem:[%s1413_s3 + $0x1f8] sm:$0xff] %v717_v39 }
 0x11d   :  { %747 = vst [vmem:[%s1413_s3 + $0xe8] sm:$0xff] %v683_v40  ;;  %779 = vst [vmem:[%s1413_s3 + $0x1e8] sm:$0xff] %v715_v38 }

// kernel: encoder.3
= control target key start
LH: loop header
LB: loop body
LE: loop exit
PB: predicated region body
PF: predicated region fallthrough
CT: control target
= control target key end

     0   :  { %v682_v0 = vmov 0   ;;  %vm270_vm0 = vcmask 130048   ;;  %s975_s1 = inlined_call_operand.vmem [shape: bf16[144,128], index: 1, kind: input, shape index: {}]   ;;  %s976_s0 = inlined_call_operand.vmem [shape: bf16[256,144], index: 0, kind: input, shape index: {}]   ;;  %s977_s2 = inlined_call_operand.vmem [shape: f32[1,128], index: 2, kind: input, shape index: {}]   ;;  %s978_s3 = inlined_call_operand.vmem [shape: f32[256,128], index: 3, kind: output, shape index: {}]  }
   0x1   :  { %319 = vmatprep.subr.bf16.mxu0 %v682_v0  ;;  %606 = vmatprep.subr.bf16.mxu1 %v682_v0  ;;  %v625_v1 = vld [vmem:[%s975_s1] sm:$0xff]   ;;  %v626_v2 = vld [vmem:[%s975_s1 + $0x8] sm:$0xff]   ;;  %v627_v3 = vld [vmem:[%s975_s1 + $0x10] sm:$0xff]  }
   0x2   :  { %320 = vmatpush1.bf16.msra.mxu0 %v625_v1  ;;  %615 = vmatpush1.bf16.msra.mxu1 %v625_v1  ;;  %v628_v4 = vld [vmem:[%s975_s1 + $0x18] sm:$0xff]   ;;  %v636_v5 = vld [vmem:[%s976_s0 + $0x4] ss:$8 sps:$4 sm:$0xff]   ;;  %v631_v9 = vld [vmem:[%s975_s1 + $0x30] sm:$0xff]  }
   0x3   :  { %321 = vmatprep.subr.bf16.mxu0 %v682_v0  ;;  %607 = vmatprep.subr.bf16.mxu1 %v682_v0  ;;  %v639_v6 = vld [vmem:[%s976_s0 + $0x84] ss:$8 sps:$4 sm:$0xff]   ;;  %v632_v10 = vld [vmem:[%s975_s1 + $0x38] sm:$0xff]   ;;  %v634_v12 = vld [vmem:[%s976_s0] ss:$8 sps:$4 sm:$0xff]  }
   0x4   :  { %590 = vmatprep.mubr.msk.bf16.mxu0 %vm270_vm0, %v636_v5  ;;  %598 = vmatprep.mubr.msk.bf16.mxu1 %vm270_vm0, %v639_v6  ;;  %v629_v7 = vld [vmem:[%s975_s1 + $0x20] sm:$0xff]   ;;  %v630_v8 = vld [vmem:[%s975_s1 + $0x28] sm:$0xff]   ;;  %v640_v14 = vld [vmem:[%s976_s0 + $0x14] ss:$8 sps:$4 sm:$0xff]  }
   0x5   :  { %v633_v11 = vld [vmem:[%s975_s1 + $0x40] sm:$0xff]   ;;  %v642_v15 = vld [vmem:[%s976_s0 + $0x94] ss:$8 sps:$4 sm:$0xff]   ;;  %v644_v16 = vld [vmem:[%s976_s0 + $0x10] ss:$8 sps:$4 sm:$0xff]  }
   0x6   :  { %322 = vmatpush1.bf16.msra.mxu0 %v626_v2  ;;  %616 = vmatpush1.bf16.msra.mxu1 %v626_v2  ;;  %v637_v13 = vld [vmem:[%s976_s0 + $0x80] ss:$8 sps:$4 sm:$0xff]   ;;  %v645_v17 = vld [vmem:[%s976_s0 + $0x90] ss:$8 sps:$4 sm:$0xff]   ;;  %v646_v18 = vld [vmem:[%s976_s0 + $0x24] ss:$8 sps:$4 sm:$0xff]  }
   0x7   :  { %323 = vmatprep.subr.bf16.mxu0 %v682_v0  ;;  %608 = vmatprep.subr.bf16.mxu1 %v682_v0  ;;  %v648_v19 = vld [vmem:[%s976_s0 + $0xa4] ss:$8 sps:$4 sm:$0xff]   ;;  %v650_v20 = vld [vmem:[%s976_s0 + $0x20] ss:$8 sps:$4 sm:$0xff]   ;;  %v652_v22 = vld [vmem:[%s976_s0 + $0x34] ss:$8 sps:$4 sm:$0xff]  }
   0x8   :  { %v651_v21 = vld [vmem:[%s976_s0 + $0xa0] ss:$8 sps:$4 sm:$0xff]   ;;  %v654_v23 = vld [vmem:[%s976_s0 + $0xb4] ss:$8 sps:$4 sm:$0xff]   ;;  %v656_v24 = vld [vmem:[%s976_s0 + $0x30] ss:$8 sps:$4 sm:$0xff]  }
   0x9   :  { %v657_v25 = vld [vmem:[%s976_s0 + $0xb0] ss:$8 sps:$4 sm:$0xff]   ;;  %v658_v26 = vld [vmem:[%s976_s0 + $0x44] ss:$8 sps:$4 sm:$0xff]   ;;  %v662_v28 = vld [vmem:[%s976_s0 + $0x40] ss:$8 sps:$4 sm:$0xff]  }
   0xa   :  { %324 = vmatpush1.bf16.msra.mxu0 %v627_v3  ;;  %617 = vmatpush1.bf16.msra.mxu1 %v627_v3  ;;  %v660_v27 = vld [vmem:[%s976_s0 + $0xc4] ss:$8 sps:$4 sm:$0xff]   ;;  %v663_v29 = vld [vmem:[%s976_s0 + $0xc0] ss:$8 sps:$4 sm:$0xff]   ;;  %v664_v30 = vld [vmem:[%s976_s0 + $0x54] ss:$8 sps:$4 sm:$0xff]  }
   0xb   :  { %325 = vmatprep.subr.bf16.mxu0 %v682_v0  ;;  %609 = vmatprep.subr.bf16.mxu1 %v682_v0  ;;  %v666_v31 = vld [vmem:[%s976_s0 + $0xd4] ss:$8 sps:$4 sm:$0xff]   ;;  %v668_v32 = vld [vmem:[%s976_s0 + $0x50] ss:$8 sps:$4 sm:$0xff]   ;;  %v670_v34 = vld [vmem:[%s976_s0 + $0x64] ss:$8 sps:$4 sm:$0xff]  }
   0xc   :  { %v669_v33 = vld [vmem:[%s976_s0 + $0xd0] ss:$8 sps:$4 sm:$0xff]   ;;  %v672_v35 = vld [vmem:[%s976_s0 + $0xe4] ss:$8 sps:$4 sm:$0xff]   ;;  %v674_v36 = vld [vmem:[%s976_s0 + $0x60] ss:$8 sps:$4 sm:$0xff]  }
   0xd   :  { %v675_v37 = vld [vmem:[%s976_s0 + $0xe0] ss:$8 sps:$4 sm:$0xff]   ;;  %v676_v38 = vld [vmem:[%s976_s0 + $0x74] ss:$8 sps:$4 sm:$0xff]   ;;  %v680_v40 = vld [vmem:[%s976_s0 + $0x70] ss:$8 sps:$4 sm:$0xff]  }
   0xe   :  { %326 = vmatpush1.bf16.msra.mxu0 %v628_v4  ;;  %618 = vmatpush1.bf16.msra.mxu1 %v628_v4  ;;  %v678_v39 = vld [vmem:[%s976_s0 + $0xf4] ss:$8 sps:$4 sm:$0xff]   ;;  %v681_v41 = vld [vmem:[%s976_s0 + $0xf0] ss:$8 sps:$4 sm:$0xff]   ;;  %v845_v42 = vld [vmem:[%s977_s2] ss:$0 sm:$0xff] }
   0xf   :  { %327 = vmatprep.subr.bf16.mxu0 %v682_v0  ;;  %610 = vmatprep.subr.bf16.mxu1 %v682_v0 }
  0x12   :  { %328 = vmatpush1.bf16.msra.mxu0 %v629_v7  ;;  %619 = vmatpush1.bf16.msra.mxu1 %v629_v7 }
  0x13   :  { %329 = vmatprep.subr.bf16.mxu0 %v682_v0  ;;  %611 = vmatprep.subr.bf16.mxu1 %v682_v0 }
  0x16   :  { %330 = vmatpush1.bf16.msra.mxu0 %v630_v8  ;;  %620 = vmatpush1.bf16.msra.mxu1 %v630_v8 }
  0x17   :  { %331 = vmatprep.subr.bf16.mxu0 %v682_v0  ;;  %612 = vmatprep.subr.bf16.mxu1 %v682_v0 }
  0x1a   :  { %332 = vmatpush1.bf16.msra.mxu0 %v631_v9  ;;  %621 = vmatpush1.bf16.msra.mxu1 %v631_v9 }
  0x1b   :  { %333 = vmatprep.subr.bf16.mxu0 %v682_v0  ;;  %613 = vmatprep.subr.bf16.mxu1 %v682_v0 }
  0x1e   :  { %334 = vmatpush1.bf16.msra.mxu0 %v632_v10  ;;  %622 = vmatpush1.bf16.msra.mxu1 %v632_v10 }
  0x1f   :  { %335 = vmatprep.subr.bf16.mxu0 %v682_v0  ;;  %614 = vmatprep.subr.bf16.mxu1 %v682_v0 }
  0x22   :  { %336 = vmatpush1.bf16.msra.mxu0 %v633_v11  ;;  %623 = vmatpush1.bf16.msra.mxu1 %v633_v11 }
  0x25   :  { %352 = vmatmul.mubr.bf16.vlgmr.msra.gmra.mrb[0].mxu0 %v634_v12  ;;  %416 = vmatmul.mubr.bf16.vlgmr.msra.gmra.mrb[0].mxu1 %v637_v13 }
  0x26   :  { %591 = vmatprep.mubr.msk.bf16.mxu0 %vm270_vm0, %v640_v14  ;;  %599 = vmatprep.mubr.msk.bf16.mxu1 %vm270_vm0, %v642_v15 }
  0x2d   :  { %360 = vmatmul.mubr.bf16.gmra.mrb[4].mxu0 %v644_v16  ;;  %424 = vmatmul.mubr.bf16.gmra.mrb[4].mxu1 %v645_v17 }
  0x2e   :  { %592 = vmatprep.mubr.msk.bf16.mxu0 %vm270_vm0, %v646_v18  ;;  %600 = vmatprep.mubr.msk.bf16.mxu1 %vm270_vm0, %v648_v19 }
  0x35   :  { %368 = vmatmul.mubr.bf16.gmra.mrb[8].mxu0 %v650_v20  ;;  %432 = vmatmul.mubr.bf16.gmra.mrb[8].mxu1 %v651_v21 }
  0x36   :  { %593 = vmatprep.mubr.msk.bf16.mxu0 %vm270_vm0, %v652_v22  ;;  %601 = vmatprep.mubr.msk.bf16.mxu1 %vm270_vm0, %v654_v23 }
  0x3d   :  { %376 = vmatmul.mubr.bf16.gmra.mrb[12].mxu0 %v656_v24  ;;  %440 = vmatmul.mubr.bf16.gmra.mrb[12].mxu1 %v657_v25 }
  0x3e   :  { %594 = vmatprep.mubr.msk.bf16.mxu0 %vm270_vm0, %v658_v26  ;;  %602 = vmatprep.mubr.msk.bf16.mxu1 %vm270_vm0, %v660_v27 }
  0x45   :  { %384 = vmatmul.mubr.bf16.gmra.mrb[16].mxu0 %v662_v28  ;;  %448 = vmatmul.mubr.bf16.gmra.mrb[16].mxu1 %v663_v29 }
  0x46   :  { %595 = vmatprep.mubr.msk.bf16.mxu0 %vm270_vm0, %v664_v30  ;;  %603 = vmatprep.mubr.msk.bf16.mxu1 %vm270_vm0, %v666_v31 }
  0x4d   :  { %392 = vmatmul.mubr.bf16.gmra.mrb[20].mxu0 %v668_v32  ;;  %456 = vmatmul.mubr.bf16.gmra.mrb[20].mxu1 %v669_v33 }
  0x4e   :  { %596 = vmatprep.mubr.msk.bf16.mxu0 %vm270_vm0, %v670_v34  ;;  %604 = vmatprep.mubr.msk.bf16.mxu1 %vm270_vm0, %v672_v35 }
  0x55   :  { %400 = vmatmul.mubr.bf16.gmra.mrb[24].mxu0 %v674_v36  ;;  %464 = vmatmul.mubr.bf16.gmra.mrb[24].mxu1 %v675_v37 }
  0x56   :  { %597 = vmatprep.mubr.msk.bf16.mxu0 %vm270_vm0, %v676_v38  ;;  %605 = vmatprep.mubr.msk.bf16.mxu1 %vm270_vm0, %v678_v39 }
  0x5d   :  { %408 = vmatmul.mubr.bf16.gmra.mrb[28].mxu0 %v680_v40  ;;  %472 = vmatmul.mubr.bf16.gmra.mrb[28].mxu1 %v681_v41 }
  0xf8   :  { %v353_v43 = vpop.f32.mrb[0].mxu0  ;;  %v417_v44 = vpop.f32.mrb[0].mxu1 }
  0xf9   :  { %v354_v45 = vadd.f32 %v845_v42, %v353_v43  ;;  %v418_v46 = vadd.f32 %v845_v42, %v417_v44  ;;  %v355_v47 = vpop.f32.mrb[1].mxu0  ;;  %v419_v48 = vpop.f32.mrb[1].mxu1 }
  0xfa   :  { %v356_v49 = vpop.f32.mrb[2].mxu0  ;;  %v420_v50 = vpop.f32.mrb[2].mxu1 }
  0xfb   :  { %v480_v51 = vmax.f32 %v354_v45, 0.0  ;;  %v496_v52 = vmax.f32 %v418_v46, 0.0  ;;  %v357_v53 = vadd.f32 %v845_v42, %v356_v49  ;;  %v421_v54 = vadd.f32 %v845_v42, %v420_v50  ;;  %v358_v55 = vpop.f32.mrb[3].mxu0  ;;  %v422_v56 = vpop.f32.mrb[3].mxu1 }
  0xfd   :  { %512 = vst [vmem:[%s978_s3] sm:$0xff] %v480_v51  ;;  %528 = vst [vmem:[%s978_s3 + $0x80] sm:$0xff] %v496_v52  ;;  %v481_v57 = vmax.f32 %v357_v53, 0.0  ;;  %v497_v58 = vmax.f32 %v421_v54, 0.0 }
  0xff   :  { %513 = vst [vmem:[%s978_s3 + $0x8] sm:$0xff] %v481_v57  ;;  %529 = vst [vmem:[%s978_s3 + $0x88] sm:$0xff] %v497_v58 }
 0x100   :  { %v361_v59 = vpop.f32.mrb[4].mxu0  ;;  %v425_v60 = vpop.f32.mrb[4].mxu1 }
 0x101   :  { %v362_v61 = vadd.f32 %v845_v42, %v361_v59  ;;  %v426_v62 = vadd.f32 %v845_v42, %v425_v60  ;;  %v363_v63 = vpop.f32.mrb[5].mxu0  ;;  %v427_v0 = vpop.f32.mrb[5].mxu1 }
 0x102   :  { %v364_v1 = vpop.f32.mrb[6].mxu0  ;;  %v428_v2 = vpop.f32.mrb[6].mxu1 }
 0x103   :  { %v482_v3 = vmax.f32 %v362_v61, 0.0  ;;  %v498_v4 = vmax.f32 %v426_v62, 0.0  ;;  %v365_v5 = vadd.f32 %v845_v42, %v364_v1  ;;  %v429_v6 = vadd.f32 %v845_v42, %v428_v2  ;;  %v366_v7 = vpop.f32.mrb[7].mxu0  ;;  %v430_v8 = vpop.f32.mrb[7].mxu1 }
 0x105   :  { %514 = vst [vmem:[%s978_s3 + $0x10] sm:$0xff] %v482_v3  ;;  %530 = vst [vmem:[%s978_s3 + $0x90] sm:$0xff] %v498_v4  ;;  %v483_v9 = vmax.f32 %v365_v5, 0.0  ;;  %v499_v10 = vmax.f32 %v429_v6, 0.0 }
 0x107   :  { %515 = vst [vmem:[%s978_s3 + $0x18] sm:$0xff] %v483_v9  ;;  %531 = vst [vmem:[%s978_s3 + $0x98] sm:$0xff] %v499_v10 }
 0x108   :  { %v369_v11 = vpop.f32.mrb[8].mxu0  ;;  %v433_v12 = vpop.f32.mrb[8].mxu1 }
 0x109   :  { %v370_v13 = vadd.f32 %v845_v42, %v369_v11  ;;  %v434_v14 = vadd.f32 %v845_v42, %v433_v12  ;;  %v371_v15 = vpop.f32.mrb[9].mxu0  ;;  %v435_v16 = vpop.f32.mrb[9].mxu1 }
 0x10a   :  { %v372_v17 = vpop.f32.mrb[10].mxu0  ;;  %v436_v18 = vpop.f32.mrb[10].mxu1 }
 0x10b   :  { %v484_v19 = vmax.f32 %v370_v13, 0.0  ;;  %v500_v20 = vmax.f32 %v434_v14, 0.0  ;;  %v373_v21 = vadd.f32 %v845_v42, %v372_v17  ;;  %v437_v22 = vadd.f32 %v845_v42, %v436_v18  ;;  %v374_v23 = vpop.f32.mrb[11].mxu0  ;;  %v438_v24 = vpop.f32.mrb[11].mxu1 }
 0x10d   :  { %516 = vst [vmem:[%s978_s3 + $0x20] sm:$0xff] %v484_v19  ;;  %532 = vst [vmem:[%s978_s3 + $0xa0] sm:$0xff] %v500_v20  ;;  %v485_v25 = vmax.f32 %v373_v21, 0.0  ;;  %v501_v26 = vmax.f32 %v437_v22, 0.0 }
 0x10f   :  { %517 = vst [vmem:[%s978_s3 + $0x28] sm:$0xff] %v485_v25  ;;  %533 = vst [vmem:[%s978_s3 + $0xa8] sm:$0xff] %v501_v26 }
 0x110   :  { %v377_v27 = vpop.f32.mrb[12].mxu0  ;;  %v441_v28 = vpop.f32.mrb[12].mxu1 }
 0x111   :  { %v378_v29 = vadd.f32 %v845_v42, %v377_v27  ;;  %v442_v30 = vadd.f32 %v845_v42, %v441_v28  ;;  %v379_v31 = vpop.f32.mrb[13].mxu0  ;;  %v443_v32 = vpop.f32.mrb[13].mxu1 }
 0x112   :  { %v380_v33 = vpop.f32.mrb[14].mxu0  ;;  %v444_v34 = vpop.f32.mrb[14].mxu1 }
 0x113   :  { %v486_v35 = vmax.f32 %v378_v29, 0.0  ;;  %v502_v36 = vmax.f32 %v442_v30, 0.0  ;;  %v381_v37 = vadd.f32 %v845_v42, %v380_v33  ;;  %v445_v38 = vadd.f32 %v845_v42, %v444_v34  ;;  %v382_v39 = vpop.f32.mrb[15].mxu0  ;;  %v446_v40 = vpop.f32.mrb[15].mxu1 }
 0x115   :  { %518 = vst [vmem:[%s978_s3 + $0x30] sm:$0xff] %v486_v35  ;;  %534 = vst [vmem:[%s978_s3 + $0xb0] sm:$0xff] %v502_v36  ;;  %v487_v41 = vmax.f32 %v381_v37, 0.0  ;;  %v503_v43 = vmax.f32 %v445_v38, 0.0 }
 0x117   :  { %519 = vst [vmem:[%s978_s3 + $0x38] sm:$0xff] %v487_v41  ;;  %535 = vst [vmem:[%s978_s3 + $0xb8] sm:$0xff] %v503_v43 }
 0x118   :  { %v385_v44 = vpop.f32.mrb[16].mxu0  ;;  %v449_v45 = vpop.f32.mrb[16].mxu1 }
 0x119   :  { %v386_v46 = vadd.f32 %v845_v42, %v385_v44  ;;  %v450_v47 = vadd.f32 %v845_v42, %v449_v45  ;;  %v387_v48 = vpop.f32.mrb[17].mxu0  ;;  %v451_v49 = vpop.f32.mrb[17].mxu1 }
 0x11a   :  { %v388_v50 = vpop.f32.mrb[18].mxu0  ;;  %v452_v51 = vpop.f32.mrb[18].mxu1 }
 0x11b   :  { %v488_v52 = vmax.f32 %v386_v46, 0.0  ;;  %v504_v53 = vmax.f32 %v450_v47, 0.0  ;;  %v389_v54 = vadd.f32 %v845_v42, %v388_v50  ;;  %v453_v55 = vadd.f32 %v845_v42, %v452_v51  ;;  %v390_v56 = vpop.f32.mrb[19].mxu0  ;;  %v454_v57 = vpop.f32.mrb[19].mxu1 }
 0x11d   :  { %520 = vst [vmem:[%s978_s3 + $0x40] sm:$0xff] %v488_v52  ;;  %536 = vst [vmem:[%s978_s3 + $0xc0] sm:$0xff] %v504_v53  ;;  %v489_v58 = vmax.f32 %v389_v54, 0.0  ;;  %v505_v59 = vmax.f32 %v453_v55, 0.0 }
 0x11f   :  { %521 = vst [vmem:[%s978_s3 + $0x48] sm:$0xff] %v489_v58  ;;  %537 = vst [vmem:[%s978_s3 + $0xc8] sm:$0xff] %v505_v59 }
 0x120   :  { %v393_v60 = vpop.f32.mrb[20].mxu0  ;;  %v457_v61 = vpop.f32.mrb[20].mxu1 }
 0x121   :  { %v394_v62 = vadd.f32 %v845_v42, %v393_v60  ;;  %v458_v63 = vadd.f32 %v845_v42, %v457_v61  ;;  %v395_v0 = vpop.f32.mrb[21].mxu0  ;;  %v459_v1 = vpop.f32.mrb[21].mxu1 }
 0x122   :  { %v396_v2 = vpop.f32.mrb[22].mxu0  ;;  %v460_v3 = vpop.f32.mrb[22].mxu1 }
 0x123   :  { %v490_v4 = vmax.f32 %v394_v62, 0.0  ;;  %v506_v5 = vmax.f32 %v458_v63, 0.0  ;;  %v397_v6 = vadd.f32 %v845_v42, %v396_v2  ;;  %v461_v7 = vadd.f32 %v845_v42, %v460_v3  ;;  %v398_v8 = vpop.f32.mrb[23].mxu0  ;;  %v462_v9 = vpop.f32.mrb[23].mxu1 }
 0x125   :  { %522 = vst [vmem:[%s978_s3 + $0x50] sm:$0xff] %v490_v4  ;;  %538 = vst [vmem:[%s978_s3 + $0xd0] sm:$0xff] %v506_v5  ;;  %v491_v10 = vmax.f32 %v397_v6, 0.0  ;;  %v507_v11 = vmax.f32 %v461_v7, 0.0 }
 0x127   :  { %523 = vst [vmem:[%s978_s3 + $0x58] sm:$0xff] %v491_v10  ;;  %539 = vst [vmem:[%s978_s3 + $0xd8] sm:$0xff] %v507_v11 }
 0x128   :  { %v401_v12 = vpop.f32.mrb[24].mxu0  ;;  %v465_v13 = vpop.f32.mrb[24].mxu1 }
 0x129   :  { %v402_v14 = vadd.f32 %v845_v42, %v401_v12  ;;  %v466_v15 = vadd.f32 %v845_v42, %v465_v13  ;;  %v403_v16 = vpop.f32.mrb[25].mxu0  ;;  %v467_v17 = vpop.f32.mrb[25].mxu1 }
 0x12a   :  { %v404_v18 = vpop.f32.mrb[26].mxu0  ;;  %v468_v19 = vpop.f32.mrb[26].mxu1 }
 0x12b   :  { %v492_v20 = vmax.f32 %v402_v14, 0.0  ;;  %v508_v21 = vmax.f32 %v466_v15, 0.0  ;;  %v405_v22 = vadd.f32 %v845_v42, %v404_v18  ;;  %v469_v23 = vadd.f32 %v845_v42, %v468_v19  ;;  %v406_v24 = vpop.f32.mrb[27].mxu0  ;;  %v470_v25 = vpop.f32.mrb[27].mxu1 }
 0x12d   :  { %524 = vst [vmem:[%s978_s3 + $0x60] sm:$0xff] %v492_v20  ;;  %540 = vst [vmem:[%s978_s3 + $0xe0] sm:$0xff] %v508_v21  ;;  %v493_v26 = vmax.f32 %v405_v22, 0.0  ;;  %v509_v27 = vmax.f32 %v469_v23, 0.0 }
 0x12f   :  { %525 = vst [vmem:[%s978_s3 + $0x68] sm:$0xff] %v493_v26  ;;  %541 = vst [vmem:[%s978_s3 + $0xe8] sm:$0xff] %v509_v27 }
 0x130   :  { %v409_v28 = vpop.f32.mrb[28].mxu0  ;;  %v473_v29 = vpop.f32.mrb[28].mxu1 }
 0x131   :  { %v410_v30 = vadd.f32 %v845_v42, %v409_v28  ;;  %v474_v31 = vadd.f32 %v845_v42, %v473_v29  ;;  %v411_v32 = vpop.f32.mrb[29].mxu0  ;;  %v475_v33 = vpop.f32.mrb[29].mxu1 }
 0x132   :  { %v412_v34 = vpop.f32.mrb[30].mxu0  ;;  %v476_v35 = vpop.f32.mrb[30].mxu1 }
 0x133   :  { %v494_v36 = vmax.f32 %v410_v30, 0.0  ;;  %v510_v37 = vmax.f32 %v474_v31, 0.0  ;;  %v413_v38 = vadd.f32 %v845_v42, %v412_v34  ;;  %v477_v39 = vadd.f32 %v845_v42, %v476_v35  ;;  %v414_v40 = vpop.f32.mrb[31].mxu0  ;;  %v478_v41 = vpop.f32.mrb[31].mxu1 }
 0x135   :  { %526 = vst [vmem:[%s978_s3 + $0x70] sm:$0xff] %v494_v36  ;;  %542 = vst [vmem:[%s978_s3 + $0xf0] sm:$0xff] %v510_v37  ;;  %v495_v43 = vmax.f32 %v413_v38, 0.0  ;;  %v511_v44 = vmax.f32 %v477_v39, 0.0 }
 0x137   :  { %527 = vst [vmem:[%s978_s3 + $0x78] sm:$0xff] %v495_v43  ;;  %543 = vst [vmem:[%s978_s3 + $0xf8] sm:$0xff] %v511_v44 }

</bundles_post_ra>
